<compile_context>
chip_gen: v5e
topology: v5e:2x2
jax: 0.10.0
libtpu: 0.0.40
codegen_flags: <defaults>
</compile_context>

<pallas_src>
import jax
import jax.numpy as jnp
from jax import lax
from jax.experimental import pallas as pl
from jax.experimental.pallas import tpu as pltpu

EPS = 1e-12  # F.normalize default eps


def convnorm_kernel(x_ref, w_ref, o_ref):
    # x_ref: (C, t_hw)  channel-major slab of one batch element (channels on
    #                   sublanes, spatial positions on lanes)
    # w_ref: (K, C)     pre-normalized, pre-scaled (x10) weights (resident)
    # o_ref: (K, t_hw)
    x = x_ref[...]
    sum_sq = jnp.sum(x * x, axis=0, keepdims=True)          # (1, t_hw)
    # v / max(||v||, eps) == v * rsqrt(max(||v||^2, eps^2)); eps^2=1e-24 is a
    # normal f32, so numerics match F.normalize.
    inv = lax.rsqrt(jnp.maximum(sum_sq, EPS * EPS))         # EUP rsqrt
    xn = x * inv                                            # broadcast over C
    # (K, C) @ (C, t_hw): contraction over C expressed natively, no transpose.
    o_ref[...] = jnp.dot(w_ref[...], xn,
                         preferred_element_type=jnp.float32).astype(o_ref.dtype)


def conv_norm(x, w, t_hw=None):
    """x: (N, C, H, W) float32, w: (K, C, 1, 1) float32 -> (N, K, H, W)."""
    N, C, H, W = x.shape
    K = w.shape[0]
    HW = H * W

    if t_hw is None:
        # Lane tile: keep double-buffered (x + out) tiles <= ~16 MiB so the
        # kernel pipelines comfortably within scoped VMEM on v5e/v6e/v7x.
        budget = 16 * 1024 * 1024
        per_col = 4 * 2 * (C + K)              # f32, double-buffered in + out
        cap = max(512, (budget // per_col) // 128 * 128)
        t_hw = HW if HW <= cap else cap
    # Mosaic layout rule: last block dim must be a multiple of 128 or the full
    # extent of the array dimension.
    assert t_hw == HW or t_hw % 128 == 0

    # Free reshapes: contiguous NCHW is exactly (N, C, HW); (K, C, 1, 1)->(K, C).
    x3 = x.reshape(N, C, HW)
    w2 = w.reshape(K, C).astype(jnp.float32)

    # Hoisted one-time work on the tiny (K, C) weights: L2-normalize over C and
    # fold in the *10 output scale.
    w_sum_sq = jnp.sum(w2 * w2, axis=1, keepdims=True)
    wn = (w2 * lax.rsqrt(jnp.maximum(w_sum_sq, EPS * EPS))) * 10.0

    out = pl.pallas_call(
        convnorm_kernel,
        out_shape=jax.ShapeDtypeStruct((N, K, HW), x.dtype),
        grid=(N, pl.cdiv(HW, t_hw)),
        in_specs=[
            pl.BlockSpec((None, C, t_hw), lambda n, j: (n, 0, j)),  # x slab
            pl.BlockSpec((K, C), lambda n, j: (0, 0)),              # weights
        ],
        out_specs=pl.BlockSpec((None, K, t_hw), lambda n, j: (n, 0, j)),
        compiler_params=pltpu.CompilerParams(
            dimension_semantics=("parallel", "parallel")),
    )(x3, wn)

    return out.reshape(N, K, H, W)


def _reference(x, w):
    # plain-JAX reference of the PyTorch forward, for sanity only
    xn = x / jnp.maximum(jnp.sqrt(jnp.sum(x * x, axis=1, keepdims=True)), EPS)
    w2 = w[:, :, 0, 0]
    wn = w2 / jnp.maximum(
        jnp.sqrt(jnp.sum(w2 * w2, axis=1, keepdims=True)), EPS)
    return jnp.einsum("nchw,kc->nkhw", xn, wn) * 10.0


if __name__ == "__main__":
    key = jax.random.PRNGKey(0)
    kx, kw = jax.random.split(key)

    N, C, H, W = 2, 4, 16, 16      # batch, in_channels, spatial
    K = 8                           # n_kernels

    x = jax.random.normal(kx, (N, C, H, W), dtype=jnp.float32)

    # Deterministic xavier_normal_-style init: std = sqrt(2 / (fan_in+fan_out))
    fan_in, fan_out = C * 1 * 1, K * 1 * 1
    std = (2.0 / (fan_in + fan_out)) ** 0.5
    w = std * jax.random.normal(kw, (K, C, 1, 1), dtype=jnp.float32)

    out = jax.block_until_ready(conv_norm(x, w))

    ref = _reference(x, w)
    assert out.shape == (N, K, H, W)
    assert jnp.allclose(out, ref, atol=1e-4, rtol=1e-4), (
        float(jnp.max(jnp.abs(out - ref))))

    print("KERNEL_OK")
</pallas_src>

<mosaic_0001>
module attributes {stable_mosaic.version = 11 : i64} {
  func.func @convnorm_kernel(%arg0: i32, %arg1: i32, %arg2: memref<1x4x256xf32, #tpu.memory_space<vmem>>, %arg3: memref<8x4xf32, #tpu.memory_space<vmem>>, %arg4: memref<1x8x256xf32, #tpu.memory_space<vmem>>) attributes {dimension_semantics = [#tpu.dimension_semantics<parallel>, #tpu.dimension_semantics<parallel>], iteration_bounds = array<i64: 2, 1>, scalar_prefetch = 0 : i64, scratch_operands = 0 : i64, tpu.core_type = #tpu.core_type<tc>, window_params = [{transform_indices = @transform_0, window_bounds = array<i64: 1, 4, 256>}, {pipeline_mode = #tpu.pipeline_mode<synchronous>, transform_indices = @transform_1, window_bounds = array<i64: 8, 4>}, {transform_indices = @transform_2, window_bounds = array<i64: 1, 8, 256>}]} {
    %c0 = arith.constant 0 : index
    %c0_0 = arith.constant 0 : index
    %c0_1 = arith.constant 0 : index
    %0 = vector.load %arg2[%c0, %c0_0, %c0_1] : memref<1x4x256xf32, #tpu.memory_space<vmem>>, vector<1x4x256xf32>
    %1 = vector.shape_cast %0 : vector<1x4x256xf32> to vector<4x256xf32>
    %2 = arith.mulf %1, %1 : vector<4x256xf32>
    %cst = arith.constant dense<0.000000e+00> : vector<256xf32>
    %3 = vector.multi_reduction <add>, %2, %cst [0] : vector<4x256xf32> to vector<256xf32>
    %4 = vector.shape_cast %3 : vector<256xf32> to vector<1x256xf32>
    %cst_2 = arith.constant 1.000000e-24 : f32
    %5 = vector.broadcast %cst_2 : f32 to vector<1x256xf32>
    %6 = arith.maximumf %4, %5 : vector<1x256xf32>
    %7 = math.rsqrt %6 : vector<1x256xf32>
    %8 = vector.broadcast %7 : vector<1x256xf32> to vector<4x256xf32>
    %9 = arith.mulf %1, %8 : vector<4x256xf32>
    %c0_3 = arith.constant 0 : index
    %c0_4 = arith.constant 0 : index
    %10 = vector.load %arg3[%c0_3, %c0_4] : memref<8x4xf32, #tpu.memory_space<vmem>>, vector<8x4xf32>
    %cst_5 = arith.constant dense<0.000000e+00> : vector<8x256xf32>
    %11 = tpu.matmul %10, %9, %cst_5 {dimension_numbers = #tpu.dot_dimension_numbers<[1], [0], [0], [1], [0, 0, 1, 1], [], []>} : vector<8x4xf32>, vector<4x256xf32>, vector<8x256xf32> -> vector<8x256xf32>
    %c0_6 = arith.constant 0 : index
    %c0_7 = arith.constant 0 : index
    %c0_8 = arith.constant 0 : index
    %12 = vector.load %arg4[%c0_6, %c0_7, %c0_8] : memref<1x8x256xf32, #tpu.memory_space<vmem>>, vector<1x8x256xf32>
    %13 = vector.shape_cast %12 : vector<1x8x256xf32> to vector<8x256xf32>
    %14 = vector.shape_cast %11 : vector<8x256xf32> to vector<1x8x256xf32>
    tpu.vector_store %arg4[%c0_6, %c0_7, %c0_8], %14 {strides = array<i32>} : memref<1x8x256xf32, #tpu.memory_space<vmem>>, vector<1x8x256xf32>,
    return
  }
  func.func @transform_0(%arg0: i32, %arg1: i32) -> (i32, i32, i32) {
    %c0_i32 = arith.constant 0 : i32
    %c0_i32_0 = arith.constant 0 : i32
    return %arg0, %c0_i32, %arg1 : i32, i32, i32
  }
  func.func @transform_1(%arg0: i32, %arg1: i32) -> (i32, i32) {
    %c0_i32 = arith.constant 0 : i32
    %c0_i32_0 = arith.constant 0 : i32
    %c0_i32_1 = arith.constant 0 : i32
    return %c0_i32, %c0_i32_0 : i32, i32
  }
  func.func @transform_2(%arg0: i32, %arg1: i32) -> (i32, i32, i32) {
    %c0_i32 = arith.constant 0 : i32
    %c0_i32_0 = arith.constant 0 : i32
    return %arg0, %c0_i32, %arg1 : i32, i32, i32
  }
}

</mosaic_0001>

<bundles_post_ra>
// kernel: tpu_custom_call.1
= control target key start
LH: loop header
LB: loop body
LE: loop exit
PB: predicated region body
PF: predicated region fallthrough
CT: control target
= control target key end

     0   :  { %7 = vsyncpa [#allocation3], 0  ;;  %s736_s0 = inlined_call_operand.hbm [shape: f32[2,4,256], index: 0, kind: input, shape index: {}]   ;;  %s737_s1 = inlined_call_operand.vmem [shape: f32[8,4], index: 1, kind: input, shape index: {}]   ;;  %s738_s2 = inlined_call_operand.hbm [shape: f32[2,8,256], index: 2, kind: output, shape index: {}]  }
   0x1   :  { %9 = vsyncpa [#allocation3 + $0x1], 0 }
   0x2   :  { %10 = vsyncpa [#allocation4], 0 }
   0x3   :  { %12 = vsyncpa [#allocation4 + $0x1], 0  ;;  %s607_s9 = smov 0   ;;  %s609_s10 = smov 0  }
   0x4   :  { %s611_s11 = smov 0   ;;  %s613_s12 = smov 0  }
   0x5   :  { %s615_s13 = smov 0   ;;  %s617_s14 = smov 0  }
   0x6 LB: > { %s391_s15 = sadd.s32 4294967295, %s590_s14   ;;  %s392_s16 = sadd.s32 4294967294, %s590_s14   ;;  %s590_s14 = sphi %s617_s14, %s18_s14   ;;  %s586_s13 = sphi %s615_s13, %s747_s13   ;;  %s582_s12 = sphi %s613_s12, %s746_s12   ;;  %s578_s11 = sphi %s611_s11, %s745_s11   ;;  %s574_s10 = sphi %s609_s10, %s744_s10   ;;  %s570_s9 = sphi %s607_s9, %s743_s9  }
   0x7   : > { %s30_s17 = sadd.s32 1, %s586_s13  ;;  %s39_s18 = sadd.s32 1, %s578_s11 }
   0x8   : > { %p32_p0 = scmp.ge.s32.totalorder %s30_s17, 2  ;;  %p46_p1 = scmp.ne.s32.totalorder %s578_s11, %s574_s10 }
   0x9   : > { %p47_p2 = scmp.eq.s32.totalorder %s590_s14, 0  ;;  %p52_p3 = scmp.ne.s32.totalorder %s574_s10, %s570_s9 }
   0xa   : > { %s749_s17 = smov (%p32_p0, %s30_s17), 0  ;;  %p53_p5 = scmp.eq.s32.totalorder %s391_s15, 0 }
   0xb   : > { %p648_p4 = por %p47_p2, %p46_p1  ;;  %s34_s20 = ssub.s32 %s586_s13, %s749_s17 }
   0xc   : > { %p99_p6 = scmp.eq.s32.totalorder %s391_s15, 1  ;;  %p37_p7 = scmp.eq.s32.totalorder %s34_s20, 0 }
   0xd   : > { %p654_p8 = por %p53_p5, %p52_p3  ;;  %p105_p10 = scmp.eq.s32.totalorder %s392_s16, 1 }
   0xe   : > { %p658_p9 = por %p99_p6, %p46_p1  ;;  %p394_p12 = scmp.ge.s32.totalorder %s590_s14, 2 }
   0xf   : > { %s663_s23 = scalar_select %p37_p7, %s578_s11, %s39_s18  }
  0x10   : > { %p665_p11 = por %p105_p10, %p52_p3  ;;  %p424_p13 = scmp.lt.s32.totalorder %s590_s14, 2 }
  0x11   : > { %s128_s25 = sand.u32 1, %s578_s11   ;;  %s410_s27 = sshll.u32 %s586_s13, 3 }
  0x12   : > { %s395_s26 = sshll.u32 %s128_s25, 3  ;;  %s139_s30 = scalar_lea.hbm %s736_s0, %s410_s27 }
  0x13   : > { %s132_s3 = scalar_lea.vmem [#allocation2], %s395_s26  ;;  %s141_s5 = sshll.u32 %s139_s30, 4  ;;  %s142_s5 = int_to_ptr.hbm [resolvable:$true] %s141_s5 }
  0x14   : > { %s143_s4 = sshll.u32 %s132_s3, 4  ;;  %p417_p0 = pnand %p424_p13, %p648_p4  ;;  %s144_s4 = int_to_ptr.vmem [resolvable:$true] %s143_s4 }
  0x15   : > { %p398_p1 = scmp.ge.s32.totalorder %s590_s14, 1  ;;  %p148_p2 = scmp.lt.s32.totalorder %s590_s14, 3 }
  0x16   : > { %s129_s6 = scalar_lea.sflag [#allocation3], %s128_s25 }
  0x17   : > { %419 = dma.hbm_to_vmem [thread:$0]  (!%p417_p0), %s142_s5, 128, %s144_s4, %s129_s6  }
  0x18   : > { %p149_p3 = pnand %p398_p1, %p148_p2 }
  0x19   : > { %s681_s7 = sand.u32 (!%p149_p3), 1, %s574_s10  }
  0x1a   : > { %152 = sbr.rel (%p149_p3) target bundleno = 221 (0xdd), region = 28  ;;  %s399_s8 = sshll.u32 (!%p149_p3), %s681_s7, 3 }
  0x1b   : > { %s155_s15 = scalar_lea.sflag (!%p149_p3), [#allocation3], %s681_s7  ;;  %s158_s16 = scalar_lea.vmem (!%p149_p3), [#allocation2], %s399_s8 }
  0x1f   : > { %561 = dma.done.wait (%p654_p8), %s155_s15, 128  }
  0x20   : > { %563 = vsyncadd (%p654_p8), %s155_s15, 4294967168  ;;  %v182_v0 = vld [vmem:[%s158_s16] sm:$0xff]  ;;  %vm190_vm0 = vcmask 1043456   ;;  %v233_v37 = vld [vmem:[%s737_s1] sm:$0xff]  ;;  %vm238_vm7 = vcmask 31744   ;;  %s400_s20 = sshll.u32 %s681_s7, 4 }
  0x21   : > { %v183_v1 = vmul.f32 %v182_v0, %v182_v0  ;;  %s411_s21 = sshll.u32 %s582_s12, 4  ;;  %s179_s28 = scalar_lea.vmem [#allocation5], %s400_s20 }
  0x22   : > { %s302_s27 = scalar_lea.hbm %s738_s2, %s411_s21  ;;  %s304_s29 = sshll.u32 %s179_s28, 4  ;;  %s305_s29 = int_to_ptr.vmem [resolvable:$true] %s304_s29 }
  0x23   : > { %185 = vst [vmem:[#allocation1] ss:$2 sm:$0xff] %v183_v1  ;;  %s306_s30 = sshll.u32 %s302_s27, 4  ;;  %s289_s3 = scalar_lea.sflag [#allocation4], %s681_s7  ;;  %s307_s30 = int_to_ptr.hbm [resolvable:$true] %s306_s30 }
  0x24   : > { %s522_s4 = sshra.s32 %s307_s30, 4  ;;  %s528_s8 = scalar_lea.hbm %s738_s2, 32  ;;  %s523_s4 = int_to_ptr.hbm [resolvable:$true] %s522_s4 }
  0x25   : > { %s524_s5 = scalar_lea.hbm %s523_s4, 16  ;;  %p529_p7 = scmp.lt.s32.totalorder %s523_s4, %s738_s2 }
  0x26   : > { %p525_p4 = scmp.ne.s32.totalorder %s523_s4, %s524_s5  ;;  %p530_p8 = scmp.lt.s32.totalorder %s528_s8, %s524_s5 }
  0x28   : > { %p526_p5 = pnand %p525_p4, %p658_p9  ;;  %p531_p10 = por %p530_p8, %p529_p7 }
  0x2a   : > { %v186_v2 = vld.sshfl [vmem:[#allocation1] sm:$0xff pattern:$0x75316420]  ;;  %v187_v3 = vld.sshfl [vmem:[#allocation1 + $0x8] sm:$0xff pattern:$0x75316420]  ;;  %p527_p6 = pneg %p526_p5 }
  0x2b   : > { %v191_v4 = vsel %vm190_vm0, %v186_v2, 0.0  ;;  %v198_v5 = vsel %vm190_vm0, %v187_v3, 0.0 }
  0x2c   : > { %v192_v6 = vrot.slane %v191_v4, 4  ;;  %v199_v7 = vrot.slane %v198_v5, 4  ;;  %p532_p13 = pnand %p531_p10, %p527_p6 }
  0x2e   : > { %v193_v8 = vadd.f32 %v192_v6, %v191_v4  ;;  %v200_v9 = vadd.f32 %v199_v7, %v198_v5 }
  0x30   : > { %v194_v10 = vrot.slane %v193_v8, 2  ;;  %v201_v11 = vrot.slane %v200_v9, 2 }
  0x32   : > { %v195_v12 = vadd.f32 %v194_v10, %v193_v8  ;;  %v202_v13 = vadd.f32 %v201_v11, %v200_v9 }
  0x34   : > { %v196_v14 = vrot.slane %v195_v12, 1  ;;  %v203_v15 = vrot.slane %v202_v13, 1 }
  0x36   : > { %v197_v16 = vadd.f32 %v196_v14, %v195_v12  ;;  %v204_v17 = vadd.f32 %v203_v15, %v202_v13 }
  0x38   : > { %v205_v18 = vmax.f32 %v197_v16, 1e-24  ;;  %v206_v19 = vmax.f32 %v204_v17, 1e-24 }
  0x3a   : > { %474 = vrsqrt.f32 %v205_v18  ;;  %vm213_vm1 = vweird.f32 %v205_v18  ;;  %vm223_vm3 = vweird.f32 %v206_v19 }
  0x3b   : > { %476 = vrsqrt.f32 %v206_v19 }
  0x40   : > { %v475_v20 = vpop.eup %474 }
  0x41   : > { %v477_v21 = vpop.eup %476  ;;  %v208_v22 = vmul.f32 %v475_v20, %v205_v18  ;;  %vm214_vm2 = vweird.f32 %v475_v20 }
  0x42   : > { %v218_v23 = vmul.f32 %v477_v21, %v206_v19  ;;  %vm224_vm4 = vweird.f32 %v477_v21  ;;  %vm215_vm5 = vmor %vm213_vm1, %vm214_vm2 }
  0x43   : > { %v209_v24 = vmul.f32 %v475_v20, %v208_v22  ;;  %vm225_vm6 = vmor %vm223_vm3, %vm224_vm4 }
  0x44   : > { %v219_v25 = vmul.f32 %v477_v21, %v218_v23 }
  0x45   : > { %v210_v26 = vmul.f32 0.5, %v209_v24 }
  0x46   : > { %v220_v27 = vmul.f32 0.5, %v219_v25 }
  0x47   : > { %v211_v28 = vsub.f32 1.5, %v210_v26 }
  0x48   : > { %v221_v29 = vsub.f32 1.5, %v220_v27 }
  0x49   : > { %v212_v30 = vmul.f32 %v475_v20, %v211_v28 }
  0x4a   : > { %v222_v31 = vmul.f32 %v477_v21, %v221_v29 }
  0x4b   : > { %v216_v32 = vsel %vm215_vm5, %v475_v20, %v212_v30 }
  0x4c   : > { %v226_v33 = vsel %vm225_vm6, %v477_v21, %v222_v31 }
  0x4d   : > { %v229_v34 = vrot.slane %v226_v33, 4 }
  0x4f   : > { %v230_v35 = vsel %vm190_vm0, %v216_v32, %v229_v34 }
  0x50   : > { %v232_v36 = vmul.f32 %v230_v35, %v182_v0 }
  0x52   : > { %235 = vst [vmem:[#allocation1] ss:$2 sm:$0xff] %v232_v36 }
  0x59   : > { %v236_v38 = vld.sshfl [vmem:[#allocation1] sm:$0xff pattern:$0x75316420]  ;;  %v237_v39 = vld.sshfl [vmem:[#allocation1 + $0x8] sm:$0xff pattern:$0x75316420] }
  0x5a   : > { %401 = vmatpush.msk.msra.mxu0 %vm190_vm0, %v236_v38  ;;  %403 = vmatpush.msk.msra.mxu1 %vm190_vm0, %v237_v39 }
  0x5b   : > { %402 = vmatmul.msk.f32.vlgmr.msra.gmra.mxu0 %vm238_vm7, %v233_v37  ;;  %404 = vmatmul.msk.f32.vlgmr.msra.gmra.mxu1 %vm238_vm7, %v233_v37 }
  0xd8   : > { %v263_v40 = vpop.f32.mrf.mxu0  ;;  %v283_v41 = vpop.f32.mrf.mxu1 }
  0xd9   : > { %286 = vst [vmem:[%s179_s28] sm:$0xff] %v263_v40 }
  0xda   : > { %287 = vst [vmem:[%s179_s28 + $0x8] sm:$0xff] %v283_v41 }
  0xdb   : > { %535 = shalt.err (!%p532_p13)
}
  0xdc   : > { %414 = dma.vmem_to_hbm [thread:$0]  (%p658_p9), %s305_s29, 256, %s307_s30, %s289_s3  }
  0xdd PF: > { %s318_s7 = sand.u32 1, %s570_s9   ;;  %p421_p0 = pnand %p394_p12, %p665_p11 }
  0xde   : > { %s319_s18 = scalar_lea.sflag [#allocation4], %s318_s7 }
  0xdf   : > { %p422_p1 = pneg %p421_p0 }
  0xe1   : > { %565 = dma.done.wait (%p422_p1), %s319_s18, 256  }
  0xe2   : > { %567 = vsyncadd (%p422_p1), %s319_s18, 4294967040  ;;  %s18_s14 = sadd.s32 1, %s590_s14   ;;  %s743_s9 = smov %s574_s10 }
  0xe3   : > { %p15_p2 = scmp.ge.s32.totalorder %s18_s14, 4   ;;  %s744_s10 = smov %s578_s11 }
  0xe4   : > { %s745_s11 = smov %s663_s23  ;;  %s746_s12 = smov %s586_s13 }
  0xe5   : > { %s747_s13 = smov %s749_s17  ;;  %17 = sbr.rel (!%p15_p2) target bundleno = 6 (0x6), region = 73 }
  0xea   :  { %325 = vsyncpa [#allocation3], 1 }
  0xeb   :  { %327 = vsyncpa [#allocation3 + $0x1], 1 }
  0xec   :  { %328 = vsyncpa [#allocation4], 1 }
  0xed   :  { %330 = vsyncpa [#allocation4 + $0x1], 1 }

</bundles_post_ra>
